<compile_context>
chip_gen: v7x
topology: tpu7x:2x2x1
jax: 0.10.0
libtpu: 0.0.40
codegen_flags: <defaults>
</compile_context>

<pallas_src>
import functools

import jax
import jax.numpy as jnp
from jax.experimental import pallas as pl
from jax.experimental.pallas import tpu as pltpu


def _round_up(x, m):
    return (x + m - 1) // m * m


def edge2node_kernel(nec_ref, mat_ref, edge_ref, w1_ref, b1_ref, w2_ref,
                     b2_ref, out_ref, *, neg_slope):
    """One (batch-tile, E-tile) grid step.

    nec_ref  : [TB, TE, N*2C] bf16 (lane-dense dominant stream)
    mat_ref  : [TB, TE, N]    bf16 (0/1 incidence, exact in bf16)
    edge_ref : [TB, TE, F]    bf16
    w1_ref   : [N*2C, N*H]    bf16 (block-diagonal Linear1 weight)
    b1_ref   : [1, N*H]       f32  (Linear1 bias tiled N times)
    w2_ref   : [N*H, N]       bf16 (block-diagonal Linear2 weight)
    b2_ref   : [1, 1]         f32  (SMEM scalar, Linear2 bias)
    out_ref  : [TB, F, N]     f32  (VMEM-resident accumulator; transposed to
                                    [N, F] in the wrapper)
    """
    e_idx = pl.program_id(1)

    @pl.when(e_idx == 0)
    def _init():
        out_ref[...] = jnp.zeros_like(out_ref)

    TB, TE, NC2 = nec_ref.shape
    N = mat_ref.shape[-1]

    # ---- attention MLP on the MXU with block-diagonal weights.
    # Fold (TB, TE) into the matmul row dim; all operands bf16, f32 accumulation.
    x = nec_ref[...].reshape(TB * TE, NC2)                       # bf16, lane-dense
    h = jnp.dot(x, w1_ref[...],
                preferred_element_type=jnp.float32) + b1_ref[...]   # [TB*TE, N*H] f32
    h = jnp.maximum(h, neg_slope * h)                            # LeakyReLU (mul+max)
    att = jnp.dot(h.astype(jnp.bfloat16), w2_ref[...],
                  preferred_element_type=jnp.float32)            # [TB*TE, N] f32
    att = att.reshape(TB, TE, N) + b2_ref[0, 0]

    # ---- weighted incidence + softmax over the node axis (torch dim=2)
    hw = att * mat_ref[...].astype(jnp.float32)                  # [TB, TE, N] f32
    m = jnp.max(hw, axis=-1, keepdims=True)
    e = jnp.exp(hw - m)
    s = jnp.sum(e, axis=-1, keepdims=True)
    p = e * pl.reciprocal(s, approx=True)                        # divide on the EUP

    # ---- partial contraction over this E tile:
    # out[b, f, n] += sum_e edge[b, e, f] * p[b, e, n]
    # Orientation keeps the big p un-transposed; only the small edge tile / tiny
    # result can be relayouted by the lowering.  bf16 operands, f32 accumulate.
    out_ref[...] += jnp.einsum('bef,ben->bfn', edge_ref[...],
                               p.astype(jnp.bfloat16),
                               preferred_element_type=jnp.float32)


def edge2node(matrix, node_edge_cat, edge, w1, b1, w2, b2, *,
              neg_slope=0.1, te=512, tb=None):
    """matrix [B,E,N], node_edge_cat [B,E,N,2C], edge [B,E,F] -> nodes [B,N,F].

    w1: [2C, H] (Linear1 weight pre-transposed as (in, out)), b1: [H],
    w2: [H] (Linear2 weight row), b2: [1].
    """
    B, E, N = matrix.shape
    F = edge.shape[-1]
    C2 = node_edge_cat.shape[-1]
    H = w1.shape[-1]

    # Batch tile (v5e/v6e: whole batch per step; v7x: pick tb=ceil(B/2) for megacore).
    if tb is None:
        tb = B
    tb = max(1, min(tb, B))

    # E tile: multiple of 16 (bf16 sublane pack), clamped; pad E/B with zeros
    # (zero edge rows / batch rows contribute exactly 0 to the accumulator).
    te = max(16, min(_round_up(te, 16), _round_up(E, 16)))
    e_pad = _round_up(E, te)
    b_pad = _round_up(B, tb)
    if e_pad != E or b_pad != B:
        matrix = jnp.pad(matrix, ((0, b_pad - B), (0, e_pad - E), (0, 0)))
        edge = jnp.pad(edge, ((0, b_pad - B), (0, e_pad - E), (0, 0)))
        node_edge_cat = jnp.pad(
            node_edge_cat, ((0, b_pad - B), (0, e_pad - E), (0, 0), (0, 0)))
    num_e = e_pad // te
    num_b = b_pad // tb

    # Lane-dense dominant stream: [B, E, N, 2C] -> [B, E, N*2C] (free HBM reshape),
    # bf16 for half the DMA bytes + bf16 MXU rate.
    nec_bf16 = node_edge_cat.reshape(b_pad, e_pad, N * C2).astype(jnp.bfloat16)
    mat_bf16 = matrix.astype(jnp.bfloat16)     # 0/1 incidence mask -> exact in bf16
    edge_bf16 = edge.astype(jnp.bfloat16)

    # Block-diagonal weights (built once): per-node Linear1/Linear2 become one
    # lane-dense matmul pair with K=N*2C and N*H-wide intermediates.
    eye_n = jnp.eye(N, dtype=jnp.float32)
    w1_bd = jnp.kron(eye_n, w1.astype(jnp.float32)).astype(jnp.bfloat16)          # [N*2C, N*H]
    w2_bd = jnp.kron(eye_n, w2.reshape(H, 1).astype(jnp.float32)).astype(jnp.bfloat16)  # [N*H, N]
    b1_t = jnp.tile(b1.astype(jnp.float32), N).reshape(1, N * H)
    b2_2d = b2.reshape(1, 1).astype(jnp.float32)

    kernel = functools.partial(edge2node_kernel, neg_slope=neg_slope)

    out_fn = pl.pallas_call(
        kernel,
        out_shape=jax.ShapeDtypeStruct((b_pad, F, N), jnp.float32),
        grid=(num_b, num_e),
        in_specs=[
            pl.BlockSpec((tb, te, N * C2), lambda b, e: (b, e, 0)),   # node_edge_cat (bf16)
            pl.BlockSpec((tb, te, N), lambda b, e: (b, e, 0)),        # matrix (bf16)
            pl.BlockSpec((tb, te, F), lambda b, e: (b, e, 0)),        # edge (bf16)
            pl.BlockSpec((N * C2, N * H), lambda b, e: (0, 0)),       # W1 block-diag (bf16)
            pl.BlockSpec((1, N * H), lambda b, e: (0, 0)),            # b1 tiled (f32)
            pl.BlockSpec((N * H, N), lambda b, e: (0, 0)),            # W2 block-diag (bf16)
            pl.BlockSpec(memory_space=pltpu.MemorySpace.SMEM),        # b2 scalar (f32)
        ],
        out_specs=pl.BlockSpec((tb, F, N), lambda b, e: (b, 0, 0)),
        compiler_params=pltpu.CompilerParams(
            dimension_semantics=("parallel", "arbitrary")),
    )(nec_bf16, mat_bf16, edge_bf16, w1_bd, b1_t, w2_bd, b2_2d)

    # [B, F, N] -> [B, N, F]: tiny transpose done by XLA on the small result.
    return jnp.swapaxes(out_fn[:B], 1, 2)


def edge2node_ref(matrix, node_edge_cat, edge, w1, b1, w2, b2, neg_slope=0.1):
    """Pure-JAX f32 reference matching the PyTorch forward (eval mode)."""
    h = node_edge_cat @ w1 + b1                          # [B, E, N, H]
    h = jnp.where(h > 0, h, neg_slope * h)
    att = jnp.einsum('benh,h->ben', h, w2) + b2[0]       # [B, E, N]
    hw = att * matrix
    p = jax.nn.softmax(hw, axis=2)
    return jnp.einsum('ben,bef->bnf', p, edge)           # permute(0,2,1) @ edge


if __name__ == "__main__":
    key = jax.random.PRNGKey(0)
    B, E, N = 2, 64, 16
    out_channels, hidden = 4, 32
    C2 = 2 * out_channels
    F = out_channels

    k1, k2, k3, k4, k5, k6, k7 = jax.random.split(key, 7)
    matrix = (jax.random.uniform(k1, (B, E, N)) > 0.5).astype(jnp.float32)
    node_edge_cat = jax.random.normal(k2, (B, E, N, C2), jnp.float32)
    edge = jax.random.normal(k3, (B, E, F), jnp.float32)
    # Linear(2C->H) and Linear(H->1) params, stored pre-transposed as (in, out).
    w1 = 0.1 * jax.random.normal(k4, (C2, hidden), jnp.float32)
    b1 = 0.1 * jax.random.normal(k5, (hidden,), jnp.float32)
    w2 = 0.1 * jax.random.normal(k6, (hidden,), jnp.float32)
    b2 = 0.1 * jax.random.normal(k7, (1,), jnp.float32)

    ref = edge2node_ref(matrix, node_edge_cat, edge, w1, b1, w2, b2)

    # te=16 -> 4 E-tiles per batch block: exercises init / accumulate path.
    out_tiled = edge2node(matrix, node_edge_cat, edge, w1, b1, w2, b2, te=16)
    out_tiled = jax.block_until_ready(out_tiled)
    assert out_tiled.shape == (B, N, F), out_tiled.shape
    # bf16 MXU operands + approx reciprocal in the softmax -> loosened tolerance.
    assert jnp.allclose(out_tiled, ref, atol=3e-2, rtol=3e-2), (
        float(jnp.max(jnp.abs(out_tiled - ref))))

    # Default tiling (single E tile at this toy size): same result path.
    out_default = edge2node(matrix, node_edge_cat, edge, w1, b1, w2, b2)
    out_default = jax.block_until_ready(out_default)
    assert out_default.shape == (B, N, F), out_default.shape
    assert jnp.allclose(out_default, ref, atol=3e-2, rtol=3e-2), (
        float(jnp.max(jnp.abs(out_default - ref))))

    print("KERNEL_OK")
</pallas_src>

<mosaic_0001>
module attributes {stable_mosaic.version = 11 : i64} {
  func.func @edge2node_kernel(%arg0: i32, %arg1: i32, %arg2: memref<2x16x128xbf16, #tpu.memory_space<vmem>>, %arg3: memref<2x16x16xbf16, #tpu.memory_space<vmem>>, %arg4: memref<2x16x4xbf16, #tpu.memory_space<vmem>>, %arg5: memref<128x512xbf16, #tpu.memory_space<vmem>>, %arg6: memref<1x512xf32, #tpu.memory_space<vmem>>, %arg7: memref<512x16xbf16, #tpu.memory_space<vmem>>, %arg8: memref<1x1xf32, #tpu.memory_space<smem>>, %arg9: memref<2x4x16xf32, #tpu.memory_space<vmem>>) attributes {dimension_semantics = [#tpu.dimension_semantics<parallel>, #tpu.dimension_semantics<arbitrary>], iteration_bounds = array<i64: 1, 4>, scalar_prefetch = 0 : i64, scratch_operands = 0 : i64, tpu.core_type = #tpu.core_type<tc>, window_params = [{transform_indices = @transform_0, window_bounds = array<i64: 2, 16, 128>}, {transform_indices = @transform_1, window_bounds = array<i64: 2, 16, 16>}, {transform_indices = @transform_2, window_bounds = array<i64: 2, 16, 4>}, {pipeline_mode = #tpu.pipeline_mode<synchronous>, transform_indices = @transform_3, window_bounds = array<i64: 128, 512>}, {pipeline_mode = #tpu.pipeline_mode<synchronous>, transform_indices = @transform_4, window_bounds = array<i64: 1, 512>}, {pipeline_mode = #tpu.pipeline_mode<synchronous>, transform_indices = @transform_5, window_bounds = array<i64: 512, 16>}, {transform_indices = @transform_6, window_bounds = array<i64: 1, 1>}, {transform_indices = @transform_7, window_bounds = array<i64: 2, 4, 16>}]} {
    %c0_i32 = arith.constant 0 : i32
    %0 = arith.cmpi eq, %arg1, %c0_i32 : i32
    %1 = arith.extui %0 : i1 to i32
    %c0_i32_0 = arith.constant 0 : i32
    %2 = arith.cmpi ne, %1, %c0_i32_0 : i32
    scf.if %2 {
      %cst_28 = arith.constant 0.000000e+00 : f32
      %39 = vector.broadcast %cst_28 : f32 to vector<2x4x16xf32>
      %c0_29 = arith.constant 0 : index
      %c0_30 = arith.constant 0 : index
      %c0_31 = arith.constant 0 : index
      %40 = vector.load %arg9[%c0_29, %c0_30, %c0_31] : memref<2x4x16xf32, #tpu.memory_space<vmem>>, vector<2x4x16xf32>
      tpu.vector_store %arg9[%c0_29, %c0_30, %c0_31], %39 {strides = array<i32>} : memref<2x4x16xf32, #tpu.memory_space<vmem>>, vector<2x4x16xf32>,
    } else {
    }
    %c0 = arith.constant 0 : index
    %c0_1 = arith.constant 0 : index
    %c0_2 = arith.constant 0 : index
    %3 = vector.load %arg2[%c0, %c0_1, %c0_2] : memref<2x16x128xbf16, #tpu.memory_space<vmem>>, vector<2x16x128xbf16>
    %4 = vector.shape_cast %3 : vector<2x16x128xbf16> to vector<32x128xbf16>
    %c0_3 = arith.constant 0 : index
    %c0_4 = arith.constant 0 : index
    %5 = vector.load %arg5[%c0_3, %c0_4] : memref<128x512xbf16, #tpu.memory_space<vmem>>, vector<128x512xbf16>
    %cst = arith.constant dense<0.000000e+00> : vector<32x512xf32>
    %6 = tpu.matmul %4, %5, %cst {dimension_numbers = #tpu.dot_dimension_numbers<[1], [0], [0], [1], [0, 0, 1, 1], [], []>} : vector<32x128xbf16>, vector<128x512xbf16>, vector<32x512xf32> -> vector<32x512xf32>
    %c0_5 = arith.constant 0 : index
    %c0_6 = arith.constant 0 : index
    %7 = vector.load %arg6[%c0_5, %c0_6] : memref<1x512xf32, #tpu.memory_space<vmem>>, vector<1x512xf32>
    %8 = vector.broadcast %7 : vector<1x512xf32> to vector<32x512xf32>
    %9 = arith.addf %6, %8 : vector<32x512xf32>
    %cst_7 = arith.constant 1.000000e-01 : f32
    %10 = vector.broadcast %cst_7 : f32 to vector<32x512xf32>
    %11 = arith.mulf %10, %9 : vector<32x512xf32>
    %12 = arith.maximumf %9, %11 : vector<32x512xf32>
    %13 = arith.truncf %12 : vector<32x512xf32> to vector<32x512xbf16>
    %c0_8 = arith.constant 0 : index
    %c0_9 = arith.constant 0 : index
    %14 = vector.load %arg7[%c0_8, %c0_9] : memref<512x16xbf16, #tpu.memory_space<vmem>>, vector<512x16xbf16>
    %cst_10 = arith.constant dense<0.000000e+00> : vector<32x16xf32>
    %15 = tpu.matmul %13, %14, %cst_10 {dimension_numbers = #tpu.dot_dimension_numbers<[1], [0], [0], [1], [0, 0, 1, 1], [], []>} : vector<32x512xbf16>, vector<512x16xbf16>, vector<32x16xf32> -> vector<32x16xf32>
    %16 = vector.shape_cast %15 : vector<32x16xf32> to vector<2x16x16xf32>
    %c0_11 = arith.constant 0 : index
    %c0_12 = arith.constant 0 : index
    %17 = memref.load %arg8[%c0_11, %c0_12] : memref<1x1xf32, #tpu.memory_space<smem>>
    %18 = vector.broadcast %17 : f32 to vector<2x16x16xf32>
    %19 = arith.addf %16, %18 : vector<2x16x16xf32>
    %c0_13 = arith.constant 0 : index
    %c0_14 = arith.constant 0 : index
    %c0_15 = arith.constant 0 : index
    %20 = vector.load %arg3[%c0_13, %c0_14, %c0_15] : memref<2x16x16xbf16, #tpu.memory_space<vmem>>, vector<2x16x16xbf16>
    %21 = arith.extf %20 : vector<2x16x16xbf16> to vector<2x16x16xf32>
    %22 = arith.mulf %19, %21 : vector<2x16x16xf32>
    %cst_16 = arith.constant dense<0xFF800000> : vector<2x16xf32>
    %23 = vector.multi_reduction <maximumf>, %22, %cst_16 [2] : vector<2x16x16xf32> to vector<2x16xf32>
    %24 = vector.shape_cast %23 : vector<2x16xf32> to vector<2x16x1xf32>
    %25 = vector.broadcast %24 : vector<2x16x1xf32> to vector<2x16x16xf32>
    %26 = arith.subf %22, %25 : vector<2x16x16xf32>
    %27 = math.exp %26 : vector<2x16x16xf32>
    %cst_17 = arith.constant dense<0.000000e+00> : vector<2x16xf32>
    %28 = vector.multi_reduction <add>, %27, %cst_17 [2] : vector<2x16x16xf32> to vector<2x16xf32>
    %29 = vector.shape_cast %28 : vector<2x16xf32> to vector<2x16x1xf32>
    %30 = tpu.reciprocal %29 {approx = true} : vector<2x16x1xf32> -> vector<2x16x1xf32>
    %31 = vector.broadcast %30 : vector<2x16x1xf32> to vector<2x16x16xf32>
    %32 = arith.mulf %27, %31 : vector<2x16x16xf32>
    %c0_18 = arith.constant 0 : index
    %c0_19 = arith.constant 0 : index
    %c0_20 = arith.constant 0 : index
    %33 = vector.load %arg9[%c0_18, %c0_19, %c0_20] : memref<2x4x16xf32, #tpu.memory_space<vmem>>, vector<2x4x16xf32>
    %c0_21 = arith.constant 0 : index
    %c0_22 = arith.constant 0 : index
    %c0_23 = arith.constant 0 : index
    %34 = vector.load %arg4[%c0_21, %c0_22, %c0_23] : memref<2x16x4xbf16, #tpu.memory_space<vmem>>, vector<2x16x4xbf16>
    %35 = arith.truncf %32 : vector<2x16x16xf32> to vector<2x16x16xbf16>
    "tpu.trace_start"() <{level = 10 : i32, message = "bef,ben->bfn"}> : () -> ()
    %cst_24 = arith.constant dense<0.000000e+00> : vector<2x4x16xf32>
    %36 = tpu.matmul %34, %35, %cst_24 {dimension_numbers = #tpu.dot_dimension_numbers<[1], [1], [2], [2], [0, 0, 0, 2, 1, 2], [0], [0]>} : vector<2x16x4xbf16>, vector<2x16x16xbf16>, vector<2x4x16xf32> -> vector<2x4x16xf32>
    "tpu.trace_stop"() : () -> ()
    %37 = arith.addf %33, %36 : vector<2x4x16xf32>
    %c0_25 = arith.constant 0 : index
    %c0_26 = arith.constant 0 : index
    %c0_27 = arith.constant 0 : index
    %38 = vector.load %arg9[%c0_25, %c0_26, %c0_27] : memref<2x4x16xf32, #tpu.memory_space<vmem>>, vector<2x4x16xf32>
    tpu.vector_store %arg9[%c0_25, %c0_26, %c0_27], %37 {strides = array<i32>} : memref<2x4x16xf32, #tpu.memory_space<vmem>>, vector<2x4x16xf32>,
    return
  }
  func.func @transform_0(%arg0: i32, %arg1: i32) -> (i32, i32, i32) {
    %c0_i32 = arith.constant 0 : i32
    %c0_i32_0 = arith.constant 0 : i32
    return %arg0, %arg1, %c0_i32 : i32, i32, i32
  }
  func.func @transform_1(%arg0: i32, %arg1: i32) -> (i32, i32, i32) {
    %c0_i32 = arith.constant 0 : i32
    %c0_i32_0 = arith.constant 0 : i32
    return %arg0, %arg1, %c0_i32 : i32, i32, i32
  }
  func.func @transform_2(%arg0: i32, %arg1: i32) -> (i32, i32, i32) {
    %c0_i32 = arith.constant 0 : i32
    %c0_i32_0 = arith.constant 0 : i32
    return %arg0, %arg1, %c0_i32 : i32, i32, i32
  }
  func.func @transform_3(%arg0: i32, %arg1: i32) -> (i32, i32) {
    %c0_i32 = arith.constant 0 : i32
    %c0_i32_0 = arith.constant 0 : i32
    %c0_i32_1 = arith.constant 0 : i32
    return %c0_i32, %c0_i32_0 : i32, i32
  }
  func.func @transform_4(%arg0: i32, %arg1: i32) -> (i32, i32) {
    %c0_i32 = arith.constant 0 : i32
    %c0_i32_0 = arith.constant 0 : i32
    %c0_i32_1 = arith.constant 0 : i32
    return %c0_i32, %c0_i32_0 : i32, i32
  }
  func.func @transform_5(%arg0: i32, %arg1: i32) -> (i32, i32) {
    %c0_i32 = arith.constant 0 : i32
    %c0_i32_0 = arith.constant 0 : i32
    %c0_i32_1 = arith.constant 0 : i32
    return %c0_i32, %c0_i32_0 : i32, i32
  }
  func.func @transform_6(%arg0: i32, %arg1: i32) -> (i32, i32) {
    %c0_i32 = arith.constant 0 : i32
    %c0_i32_0 = arith.constant 0 : i32
    %c0_i32_1 = arith.constant 0 : i32
    return %c0_i32, %c0_i32_0 : i32, i32
  }
  func.func @transform_7(%arg0: i32, %arg1: i32) -> (i32, i32, i32) {
    %c0_i32 = arith.constant 0 : i32
    %c0_i32_0 = arith.constant 0 : i32
    %c0_i32_1 = arith.constant 0 : i32
    return %arg0, %c0_i32, %c0_i32_0 : i32, i32, i32
  }
}

</mosaic_0001>

<bundles_post_ra>
// kernel: tpu_custom_call.1
= control target key start
LH: loop header
LB: loop body
LE: loop exit
PB: predicated region body
PF: predicated region fallthrough
CT: control target
= control target key end

     0   :  { %s2349_s0 = inlined_call_operand.vmem [shape: bf16[2,64,128], index: 0, kind: input, shape index: {}]   ;;  %s2350_s1 = inlined_call_operand.vmem [shape: bf16[2,64,16], index: 1, kind: input, shape index: {}]   ;;  %s2351_s2 = inlined_call_operand.vmem [shape: bf16[2,64,4], index: 2, kind: input, shape index: {}]   ;;  %s2352_s3 = inlined_call_operand.vmem [shape: bf16[128,512], index: 3, kind: input, shape index: {}]   ;;  %s2353_s4 = inlined_call_operand.vmem [shape: f32[1,512], index: 4, kind: input, shape index: {}]   ;;  %s2354_s5 = inlined_call_operand.vmem [shape: bf16[512,16], index: 5, kind: input, shape index: {}]   ;;  %s2355_s6 = inlined_call_operand.<no memory space> [shape: f32[1,1], index: 6, kind: input, shape index: {}]   ;;  %s2356_s7 = inlined_call_operand.hbm [shape: f32[2,4,16], index: 7, kind: output, shape index: {}]  }
   0x1   :  { %12 = sst [smem:[#allocation2]] %s2355_s6 }
   0x2   :  { %13 = vsyncpa [#allocation7], 0  ;;  %s2012_s26 = smov 0   ;;  %s2014_s27 = smov 0  }
   0x3   :  { %s2016_s28 = smov 0   ;;  %s2018_s29 = smov 0  }
   0x4   :  { %s2020_s30 = smov 0  }
   0x5 LB: > { %s1564_s6 = sadd.s32 4294967295, %s1960_s30   ;;  %s28_s8 = sadd.s32 1, %s1956_s29  ;;  %s1960_s30 = sphi %s2020_s30, %s19_s30   ;;  %s1956_s29 = sphi %s2018_s29, %s2362_s29   ;;  %s1952_s28 = sphi %s2016_s28, %s2361_s28   ;;  %s1948_s27 = sphi %s2014_s27, %s2360_s27   ;;  %s1944_s26 = sphi %s2012_s26, %s2359_s26  }
   0x6   : > { %p29_p0 = scmp.ge.s32.totalorder %s28_s8, 4  ;;  %p47_p1 = scmp.ne.s32.totalorder %s1948_s27, %s1944_s26 }
   0x7   : > { %p48_p2 = scmp.eq.s32.totalorder %s1960_s30, 0  ;;  %s40_s11 = sadd.s32 1, %s1948_s27 }
   0x8   : > { %s2364_s8 = smov (%p29_p0, %s28_s8), 0  ;;  %p1566_p5 = scmp.ge.s32.totalorder %s1960_s30, 4 }
   0x9   : > { %p2044_p3 = por %p48_p2, %p47_p1  ;;  %s36_s10 = ssub.s32 %s1956_s29, %s2364_s8 }
   0xa   : > { %p38_p4 = scmp.eq.s32.totalorder %s36_s10, 0  ;;  %251 = sbr.rel (%p1566_p5) target bundleno = 38 (0x26), region = 32 }
   0xc   : > { %s2052_s12 = scalar_select %p38_p4, %s1948_s27, %s40_s11  }
  0x11   : > { %254 = sbr.rel (!%p2044_p3) target bundleno = 24 (0x18), region = 36  ;;  %s256_s13 = sand.u32 (%p2044_p3), 1, %s1948_s27  }
  0x12   : > { %s1655_s14 = sshll.u32 (%p2044_p3), %s1956_s29, 3  ;;  %s1567_s15 = sshll.u32 (%p2044_p3), %s256_s13, 4 }
  0x13   : > { %s264_s18 = scalar_lea.vmem (%p2044_p3), %s2349_s0, %s1655_s14  ;;  %s258_s19 = scalar_lea.vmem (%p2044_p3), [#allocation3], %s1567_s15 }
  0x14   : > { %v280_v0 = vld [vmem:[%s264_s18] sm:$0xff] (%p2044_p3)  }
  0x15   : > { %v284_v1 = vld [vmem:[%s264_s18 + $0x20] sm:$0xff] (%p2044_p3)   ;;  %281 = vst [vmem:[%s258_s19] sm:$0xff] (%p2044_p3), %v280_v0  }
  0x16   : > { %285 = vst [vmem:[%s258_s19 + $0x8] sm:$0xff] (%p2044_p3), %v284_v1  }
  0x18 PF: > { %318 = sbr.rel (!%p2044_p3) target bundleno = 31 (0x1f), region = 77  ;;  %s320_s20 = sand.u32 (%p2044_p3), 1, %s1948_s27  }
  0x19   : > { %s1656_s21 = sshll.u32 (%p2044_p3), %s1956_s29, 3  ;;  %s1570_s22 = sshll.u32 (%p2044_p3), %s320_s20, 4 }
  0x1a   : > { %s328_s25 = scalar_lea.vmem (%p2044_p3), %s2350_s1, %s1656_s21  ;;  %s322_s10 = scalar_lea.vmem (%p2044_p3), [#allocation4], %s1570_s22 }
  0x1b   : > { %v344_v2 = vld [vmem:[%s328_s25] sm:$0xff] (%p2044_p3)  }
  0x1c   : > { %v348_v3 = vld [vmem:[%s328_s25 + $0x20] sm:$0xff] (%p2044_p3)   ;;  %345 = vst [vmem:[%s322_s10] sm:$0xff] (%p2044_p3), %v344_v2  }
  0x1d   : > { %349 = vst [vmem:[%s322_s10 + $0x8] sm:$0xff] (%p2044_p3), %v348_v3  }
  0x1f PF: > { %382 = sbr.rel (!%p2044_p3) target bundleno = 38 (0x26), region = 118  ;;  %s384_s11 = sand.u32 (%p2044_p3), 1, %s1948_s27  }
  0x20   : > { %s1657_s13 = sshll.u32 (%p2044_p3), %s1956_s29, 3  ;;  %s1573_s14 = sshll.u32 (%p2044_p3), %s384_s11, 4 }
  0x21   : > { %s392_s17 = scalar_lea.vmem (%p2044_p3), %s2351_s2, %s1657_s13  ;;  %s386_s18 = scalar_lea.vmem (%p2044_p3), [#allocation5], %s1573_s14 }
  0x22   : > { %v408_v4 = vld [vmem:[%s392_s17] sm:$0xff] (%p2044_p3)  }
  0x23   : > { %v412_v5 = vld [vmem:[%s392_s17 + $0x20] sm:$0xff] (%p2044_p3)   ;;  %409 = vst [vmem:[%s386_s18] sm:$0xff] (%p2044_p3), %v408_v4  }
  0x24   : > { %413 = vst [vmem:[%s386_s18 + $0x8] sm:$0xff] (%p2044_p3), %v412_v5  }
  0x26 PF: > { %p1576_p6 = scmp.ge.s32.totalorder %s1960_s30, 1  ;;  %p445_p7 = scmp.lt.s32.totalorder %s1960_s30, 5 }
  0x28   : > { %p446_p8 = pnand %p1576_p6, %p445_p7 }
  0x29   : > { %s452_s9 = sand.u32 (!%p446_p8), 1, %s1944_s26   ;;  %p1580_p9 = scmp.ne.s32.totalorder (!%p446_p8), %s1952_s28, 0 }
  0x2a   : > { %449 = sbr.rel (%p446_p8) target bundleno = 1096 (0x448), region = 159  ;;  %s2079_s19 = sshll.u32 (!%p446_p8), %s452_s9, 4 }
  0x2b   : > { %s454_s20 = scalar_lea.vmem (!%p446_p8), [#allocation3], %s2079_s19  ;;  %s461_s21 = scalar_lea.vmem (!%p446_p8), [#allocation4], %s2079_s19 }
  0x2c   : > { %s468_s22 = scalar_lea.vmem (!%p446_p8), [#allocation5], %s2079_s19 }
  0x31   : > { %511 = sbr.rel (%p1580_p9) target bundleno = 56 (0x38), region = 175  ;;  %vm512_vm0 = vcmask (!%p1580_p9), 125952   ;;  %v1962_v6 = vmov (!%p1580_p9), 0.0  }
  0x32   : > { %513 = vst.msk [vmem:[#allocation6] sm:$0xf] (!%p1580_p9), %vm512_vm0, %v1962_v6  ;;  %514 = vst.msk [vmem:[#allocation6 + $0x4] sm:$0xf] (!%p1580_p9), %vm512_vm0, %v1962_v6 }
  0x38 PF: > { %v1792_v7 = vld [vmem:[%s2352_s3 + $0x4] ss:$16 sps:$4 sm:$0xff]   ;;  %v1794_v8 = vld [vmem:[%s2352_s3 + $0xc] ss:$16 sps:$4 sm:$0xff]   ;;  %v1963_v9 = vmov 0   ;;  %s1245_s24 = sld [smem:[#allocation2]] }
  0x39   : > { %777 = vmatprep.mubr.bf16.mxu0 %v1963_v9  ;;  %830 = vmatprep.mubr.bf16.mxu1 %v1963_v9  ;;  %v1796_v10 = vld [vmem:[%s2352_s3] ss:$16 sps:$4 sm:$0xff]   ;;  %v1797_v11 = vld [vmem:[%s2352_s3 + $0x8] ss:$16 sps:$4 sm:$0xff]   ;;  %v1798_v12 = vld [vmem:[%s2352_s3 + $0x24] ss:$16 sps:$4 sm:$0xff]  }
  0x3a   : > { %745 = vmatprep.subr.bf16.mxu0 %v1792_v7  ;;  %798 = vmatprep.subr.bf16.mxu1 %v1794_v8  ;;  %v1800_v13 = vld [vmem:[%s2352_s3 + $0x2c] ss:$16 sps:$4 sm:$0xff]   ;;  %v1802_v14 = vld [vmem:[%s2352_s3 + $0x20] ss:$16 sps:$4 sm:$0xff]   ;;  %v1803_v15 = vld [vmem:[%s2352_s3 + $0x28] ss:$16 sps:$4 sm:$0xff]  }
  0x3b   : > { %746 = vmatpush1.bf16.msra.mxu0 %v1796_v10  ;;  %799 = vmatpush1.bf16.msra.mxu1 %v1797_v11  ;;  %v1804_v16 = vld [vmem:[%s2352_s3 + $0x44] ss:$16 sps:$4 sm:$0xff]   ;;  %v1806_v17 = vld [vmem:[%s2352_s3 + $0x4c] ss:$16 sps:$4 sm:$0xff]   ;;  %v1808_v18 = vld [vmem:[%s2352_s3 + $0x40] ss:$16 sps:$4 sm:$0xff]   ;;  %v553_v10 = vlaneseq }
  0x3c   : > { %747 = vmatprep.subr.bf16.mxu0 %v1798_v12  ;;  %800 = vmatprep.subr.bf16.mxu1 %v1800_v13  ;;  %v1809_v19 = vld [vmem:[%s2352_s3 + $0x48] ss:$16 sps:$4 sm:$0xff]   ;;  %v1810_v20 = vld [vmem:[%s2352_s3 + $0x64] ss:$16 sps:$4 sm:$0xff]   ;;  %v1812_v21 = vld [vmem:[%s2352_s3 + $0x6c] ss:$16 sps:$4 sm:$0xff]  }
  0x3d   : > { %v1814_v22 = vld [vmem:[%s2352_s3 + $0x60] ss:$16 sps:$4 sm:$0xff]   ;;  %v1815_v23 = vld [vmem:[%s2352_s3 + $0x68] ss:$16 sps:$4 sm:$0xff]   ;;  %v1816_v24 = vld [vmem:[%s2352_s3 + $0x84] ss:$16 sps:$4 sm:$0xff]  }
  0x3e   : > { %v1818_v25 = vld [vmem:[%s2352_s3 + $0x8c] ss:$16 sps:$4 sm:$0xff]   ;;  %v1820_v26 = vld [vmem:[%s2352_s3 + $0x80] ss:$16 sps:$4 sm:$0xff]   ;;  %v1821_v27 = vld [vmem:[%s2352_s3 + $0x88] ss:$16 sps:$4 sm:$0xff]  }
  0x3f   : > { %748 = vmatpush1.bf16.msra.mxu0 %v1802_v14  ;;  %801 = vmatpush1.bf16.msra.mxu1 %v1803_v15  ;;  %v1822_v28 = vld [vmem:[%s2352_s3 + $0xa4] ss:$16 sps:$4 sm:$0xff]   ;;  %v1824_v29 = vld [vmem:[%s2352_s3 + $0xac] ss:$16 sps:$4 sm:$0xff]   ;;  %v1826_v30 = vld [vmem:[%s2352_s3 + $0xa0] ss:$16 sps:$4 sm:$0xff]  }
  0x40   : > { %749 = vmatprep.subr.bf16.mxu0 %v1804_v16  ;;  %802 = vmatprep.subr.bf16.mxu1 %v1806_v17  ;;  %v1827_v31 = vld [vmem:[%s2352_s3 + $0xa8] ss:$16 sps:$4 sm:$0xff]   ;;  %v1828_v32 = vld [vmem:[%s2352_s3 + $0xc4] ss:$16 sps:$4 sm:$0xff]   ;;  %v1830_v33 = vld [vmem:[%s2352_s3 + $0xcc] ss:$16 sps:$4 sm:$0xff]  }
  0x41   : > { %v1832_v34 = vld [vmem:[%s2352_s3 + $0xc0] ss:$16 sps:$4 sm:$0xff]   ;;  %v1833_v35 = vld [vmem:[%s2352_s3 + $0xc8] ss:$16 sps:$4 sm:$0xff]   ;;  %v1834_v36 = vld [vmem:[%s2352_s3 + $0xe4] ss:$16 sps:$4 sm:$0xff]  }
  0x42   : > { %v1836_v37 = vld [vmem:[%s2352_s3 + $0xec] ss:$16 sps:$4 sm:$0xff]   ;;  %v1838_v38 = vld [vmem:[%s2352_s3 + $0xe0] ss:$16 sps:$4 sm:$0xff]   ;;  %v1839_v39 = vld [vmem:[%s2352_s3 + $0xe8] ss:$16 sps:$4 sm:$0xff]  }
  0x43   : > { %750 = vmatpush1.bf16.msra.mxu0 %v1808_v18  ;;  %803 = vmatpush1.bf16.msra.mxu1 %v1809_v19  ;;  %v1842_v40 = vld [vmem:[%s2354_s5 + $0x40] sm:$0xff]   ;;  %v1846_v45 = vld [vmem:[%s2354_s5 + $0x48] sm:$0xff]   ;;  %v1850_v50 = vld [vmem:[%s2354_s5 + $0x50] sm:$0xff]   ;;  %v554_v11 = vshrl.u32 %v553_v10, 7  ;;  %vm1263_vm1 = vcmask 130048   ;;  %vm1965_vm2 = vmmov 0  }
  0x44   : > { %751 = vmatprep.subr.bf16.mxu0 %v1810_v20  ;;  %804 = vmatprep.subr.bf16.mxu1 %v1812_v21  ;;  %v1843_v41 = vld [vmem:[%s2354_s5 + $0xc0] sm:$0xff]   ;;  %v1847_v46 = vld [vmem:[%s2354_s5 + $0xc8] sm:$0xff]   ;;  %v1851_v51 = vld [vmem:[%s2354_s5 + $0xd0] sm:$0xff]   ;;  %vm1448_vm3 = vcmask 125952   ;;  %s1966_s19 = smov [#allocation6]   ;;  %p2308_p10 = scmp.eq.s32.totalorder %s1564_s6, 3 }
  0x45   : > { %v1840_v42 = vld [vmem:[%s454_s20] sm:$0xff]   ;;  %v1848_v47 = vld [vmem:[%s2354_s5 + $0x8] sm:$0xff]   ;;  %v1854_v54 = vld [vmem:[%s2354_s5 + $0x58] sm:$0xff]   ;;  %v555_v12 = vsub.s32 0, %v554_v11  ;;  %v563_v13 = vsub.s32 2, %v554_v11  ;;  %v559_v15 = vsub.s32 1, %v554_v11 }
  0x46   : > { %v1844_v43 = vld [vmem:[%s2354_s5] sm:$0xff]   ;;  %v1849_v48 = vld [vmem:[%s2354_s5 + $0x88] sm:$0xff]   ;;  %v1852_v52 = vld [vmem:[%s2354_s5 + $0x10] sm:$0xff]   ;;  %v567_v16 = vsub.s32 3, %v554_v11 }
  0x47   : > { %752 = vmatpush1.bf16.msra.mxu0 %v1814_v22  ;;  %805 = vmatpush1.bf16.msra.mxu1 %v1815_v23  ;;  %v1845_v44 = vld [vmem:[%s2354_s5 + $0x80] sm:$0xff]   ;;  %v1841_v49 = vld [vmem:[%s454_s20 + $0x8] sm:$0xff]   ;;  %v1853_v53 = vld [vmem:[%s2354_s5 + $0x90] sm:$0xff]  }
  0x48   : > { %753 = vmatprep.subr.bf16.mxu0 %v1816_v24  ;;  %806 = vmatprep.subr.bf16.mxu1 %v1818_v25  ;;  %v1855_v55 = vld [vmem:[%s2354_s5 + $0xd8] sm:$0xff]   ;;  %v1858_v58 = vld [vmem:[%s2354_s5 + $0x60] sm:$0xff]   ;;  %v1862_v62 = vld [vmem:[%s2354_s5 + $0x68] sm:$0xff]  }
  0x49   : > { %v1856_v56 = vld [vmem:[%s2354_s5 + $0x18] sm:$0xff]   ;;  %v1859_v59 = vld [vmem:[%s2354_s5 + $0xe0] sm:$0xff]   ;;  %v1863_v63 = vld [vmem:[%s2354_s5 + $0xe8] sm:$0xff]  }
  0x4a   : > { %v1857_v57 = vld [vmem:[%s2354_s5 + $0x98] sm:$0xff]   ;;  %v1860_v60 = vld [vmem:[%s2354_s5 + $0x20] sm:$0xff]   ;;  %v1864_v0 = vld [vmem:[%s2354_s5 + $0x28] sm:$0xff]  }
  0x4b   : > { %754 = vmatpush1.bf16.msra.mxu0 %v1820_v26  ;;  %807 = vmatpush1.bf16.msra.mxu1 %v1821_v27  ;;  %v1861_v61 = vld [vmem:[%s2354_s5 + $0xa0] sm:$0xff]   ;;  %v1865_v1 = vld [vmem:[%s2354_s5 + $0xa8] sm:$0xff]   ;;  %v1866_v2 = vld [vmem:[%s2354_s5 + $0x70] sm:$0xff]  }
  0x4c   : > { %755 = vmatprep.subr.bf16.mxu0 %v1822_v28  ;;  %808 = vmatprep.subr.bf16.mxu1 %v1824_v29  ;;  %v1867_v3 = vld [vmem:[%s2354_s5 + $0xf0] sm:$0xff]   ;;  %v1870_v6 = vld [vmem:[%s2354_s5 + $0x78] sm:$0xff]   ;;  %v551_v14 = vld [vmem:[%s2353_s4] sm:$0xf] }
  0x4d   : > { %v1868_v4 = vld [vmem:[%s2354_s5 + $0x30] sm:$0xff]   ;;  %v1871_v7 = vld [vmem:[%s2354_s5 + $0xf8] sm:$0xff]   ;;  %v556_v17 = vrot.slane %v551_v14, %v555_v12  ;;  %v564_v18 = vrot.slane %v551_v14, %v563_v13  ;;  %v560_v19 = vrot.slane %v551_v14, %v559_v15  ;;  %v568_v20 = vrot.slane %v551_v14, %v567_v16 }
  0x4e   : > { %v1869_v5 = vld [vmem:[%s2354_s5 + $0xb0] sm:$0xff]   ;;  %v1872_v8 = vld [vmem:[%s2354_s5 + $0x38] sm:$0xff]  }
  0x4f   : > { %756 = vmatpush1.bf16.msra.mxu0 %v1826_v30  ;;  %809 = vmatpush1.bf16.msra.mxu1 %v1827_v31 }
  0x50   : > { %757 = vmatprep.subr.bf16.mxu0 %v1828_v32  ;;  %810 = vmatprep.subr.bf16.mxu1 %v1830_v33 }
  0x53   : > { %758 = vmatpush1.bf16.msra.mxu0 %v1832_v34  ;;  %811 = vmatpush1.bf16.msra.mxu1 %v1833_v35 }
  0x54   : > { %759 = vmatprep.subr.bf16.mxu0 %v1834_v36  ;;  %812 = vmatprep.subr.bf16.mxu1 %v1836_v37 }
  0x57   : > { %760 = vmatpush1.bf16.msra.mxu0 %v1838_v38  ;;  %813 = vmatpush1.bf16.msra.mxu1 %v1839_v39 }
  0x58   : > { %1667 = vmatprep.subr.bf16.mxu0 %v1842_v40  ;;  %1695 = vmatprep.subr.bf16.mxu1 %v1843_v41 }
  0x5a   : > { %778 = vmatmul.mubr.bf16.vlgmr.msra.gmra.mrb[0].mxu0 %v1840_v42  ;;  %831 = vmatmul.mubr.bf16.vlgmr.msra.gmra.mrb[0].mxu1 %v1840_v42 }
  0x5b   : > { %787 = vmatprep.mubr.bf16.mxu0 %v1963_v9  ;;  %840 = vmatprep.mubr.bf16.mxu1 %v1963_v9  ;;  %v1873_v9 = vld [vmem:[%s2354_s5 + $0xb8] sm:$0xff]  }
  0x5c   : > { %1668 = vmatpush3.bf16.msra.mxu0 %v1844_v43  ;;  %1696 = vmatpush3.bf16.msra.mxu1 %v1845_v44 }
  0x5d   : > { %1669 = vmatprep.subr.bf16.mxu0 %v1846_v45  ;;  %1697 = vmatprep.subr.bf16.mxu1 %v1847_v46 }
  0x60   : > { %1670 = vmatpush3.bf16.msra.mxu0 %v1848_v47  ;;  %1698 = vmatpush3.bf16.msra.mxu1 %v1849_v48 }
  0x61   : > { %1671 = vmatprep.subr.bf16.mxu0 %v1850_v50  ;;  %1699 = vmatprep.subr.bf16.mxu1 %v1851_v51 }
  0x62   : > { %788 = vmatmul.mubr.bf16.gmra.mrb[4].mxu0 %v1841_v49  ;;  %841 = vmatmul.mubr.bf16.gmra.mrb[4].mxu1 %v1841_v49 }
  0x64   : > { %1672 = vmatpush3.bf16.msra.mxu0 %v1852_v52  ;;  %1700 = vmatpush3.bf16.msra.mxu1 %v1853_v53 }
  0x65   : > { %1673 = vmatprep.subr.bf16.mxu0 %v1854_v54  ;;  %1701 = vmatprep.subr.bf16.mxu1 %v1855_v55 }
  0x68   : > { %1674 = vmatpush3.bf16.msra.mxu0 %v1856_v56  ;;  %1702 = vmatpush3.bf16.msra.mxu1 %v1857_v57 }
  0x69   : > { %1675 = vmatprep.subr.bf16.mxu0 %v1858_v58  ;;  %1703 = vmatprep.subr.bf16.mxu1 %v1859_v59 }
  0x6c   : > { %1676 = vmatpush3.bf16.msra.mxu0 %v1860_v60  ;;  %1704 = vmatpush3.bf16.msra.mxu1 %v1861_v61 }
  0x6d   : > { %1677 = vmatprep.subr.bf16.mxu0 %v1862_v62  ;;  %1705 = vmatprep.subr.bf16.mxu1 %v1863_v63 }
  0x70   : > { %1678 = vmatpush3.bf16.msra.mxu0 %v1864_v0  ;;  %1706 = vmatpush3.bf16.msra.mxu1 %v1865_v1 }
  0x71   : > { %1679 = vmatprep.subr.bf16.mxu0 %v1866_v2  ;;  %1707 = vmatprep.subr.bf16.mxu1 %v1867_v3 }
  0x74   : > { %1680 = vmatpush3.bf16.msra.mxu0 %v1868_v4  ;;  %1708 = vmatpush3.bf16.msra.mxu1 %v1869_v5 }
  0x75   : > { %1681 = vmatprep.subr.bf16.mxu0 %v1870_v6  ;;  %1709 = vmatprep.subr.bf16.mxu1 %v1871_v7 }
  0x78   : > { %1682 = vmatpush3.bf16.msra.mxu0 %v1872_v8  ;;  %1710 = vmatpush3.bf16.msra.mxu1 %v1873_v9 }
 0x12d   : > { %v779_v21 = vpop.f32.mrb[0].mxu0  ;;  %v832_v22 = vpop.f32.mrb[0].mxu1 }
 0x12e   : > { %v780_v23 = vadd.f32 %v779_v21, %v556_v17  ;;  %v833_v24 = vadd.f32 %v832_v22, %v564_v18  ;;  %v781_v25 = vpop.f32.mrb[1].mxu0  ;;  %v834_v26 = vpop.f32.mrb[1].mxu1 }
 0x12f   : > { %v782_v27 = vadd.f32 %v781_v25, %v560_v19  ;;  %v835_v28 = vadd.f32 %v834_v26, %v568_v20  ;;  %v783_v29 = vpop.f32.mrb[2].mxu0  ;;  %v836_v30 = vpop.f32.mrb[2].mxu1 }
 0x130   : > { %v851_v31 = vmul.f32 0.1, %v780_v23  ;;  %v853_v32 = vmul.f32 0.1, %v833_v24  ;;  %v784_v33 = vadd.f32 %v783_v29, %v556_v17  ;;  %v837_v34 = vadd.f32 %v836_v30, %v564_v18  ;;  %v785_v35 = vpop.f32.mrb[3].mxu0  ;;  %v838_v36 = vpop.f32.mrb[3].mxu1 }
 0x131   : > { %v852_v37 = vmul.f32 0.1, %v782_v27  ;;  %v854_v38 = vmul.f32 0.1, %v835_v28  ;;  %v786_v39 = vadd.f32 %v785_v35, %v560_v19  ;;  %v839_v40 = vadd.f32 %v838_v36, %v568_v20 }
 0x132   : > { %v855_v41 = vmul.f32 0.1, %v784_v33  ;;  %v857_v42 = vmul.f32 0.1, %v837_v34  ;;  %v867_v45 = vmax.f32 %v780_v23, %v851_v31  ;;  %v869_v46 = vmax.f32 %v833_v24, %v853_v32 }
 0x133   : > { %v856_v43 = vmul.f32 0.1, %v786_v39  ;;  %v858_v44 = vmul.f32 0.1, %v839_v40  ;;  %v868_v49 = vmax.f32 %v782_v27, %v852_v37  ;;  %v870_v50 = vmax.f32 %v835_v28, %v854_v38 }
 0x134   : > { %v871_v47 = vmax.f32 %v784_v33, %v855_v41  ;;  %v873_v48 = vmax.f32 %v837_v34, %v857_v42  ;;  %v1659_v33 = vld [vmem:[%s461_s21] sm:$0xff]  }
 0x135   : > { %v872_v51 = vmax.f32 %v786_v39, %v856_v43  ;;  %v874_v52 = vmax.f32 %v839_v40, %v858_v44  ;;  %v789_v53 = vpop.f32.mrb[4].mxu0  ;;  %v842_v54 = vpop.f32.mrb[4].mxu1  ;;  %v1246_v40 = vstv %s1245_s24  ;;  %v1660_v44 = vunpack.c.l.bf16 %v1659_v33 }
 0x136   : > { %v883_v55 = vpack.c.bf16 %v871_v47, %v867_v45  ;;  %v885_v56 = vpack.c.bf16 %v873_v48, %v869_v46  ;;  %v790_v57 = vadd.f32 %v789_v53, %v556_v17  ;;  %v843_v58 = vadd.f32 %v842_v54, %v564_v18  ;;  %v791_v59 = vpop.f32.mrb[5].mxu0  ;;  %v844_v60 = vpop.f32.mrb[5].mxu1  ;;  %v1666_v54 = vld [vmem:[%s461_s21 + $0x8] sm:$0xff]   ;;  %s1460_s21 = sshll.u32 %s1966_s19, 4  ;;  %s1461_s21 = int_to_ptr.vmem [resolvable:$true] %s1460_s21 }
 0x137   : > { %v792_v61 = vadd.f32 %v791_v59, %v560_v19  ;;  %v845_v62 = vadd.f32 %v844_v60, %v568_v20  ;;  %v793_v63 = vpop.f32.mrb[6].mxu0  ;;  %v846_v0 = vpop.f32.mrb[6].mxu1  ;;  %v884_v1 = vpack.c.bf16 %v872_v51, %v868_v49  ;;  %v886_v2 = vpack.c.bf16 %v874_v52, %v870_v50  ;;  %s1892_s26 = scalar_lea.vmem %s1461_s21, 128  ;;  %p1899_p0 = scmp.lt.s32.totalorder %s1461_s21, %s1461_s21 }
 0x138   : > { %v859_v3 = vmul.f32 0.1, %v790_v57  ;;  %v861_v4 = vmul.f32 0.1, %v843_v58  ;;  %v794_v5 = vadd.f32 %v793_v63, %v556_v17  ;;  %v847_v6 = vadd.f32 %v846_v0, %v564_v18  ;;  %v795_v7 = vpop.f32.mrb[7].mxu0  ;;  %v848_v8 = vpop.f32.mrb[7].mxu1  ;;  %p1893_p11 = scmp.ne.s32.totalorder %s1461_s21, %s1892_s26  ;;  %p1900_p1 = scmp.lt.s32.totalorder %s1892_s26, %s1892_s26 }
 0x139   : > { %v860_v9 = vmul.f32 0.1, %v792_v61  ;;  %v862_v10 = vmul.f32 0.1, %v845_v62  ;;  %v796_v11 = vadd.f32 %v795_v7, %v560_v19  ;;  %v849_v12 = vadd.f32 %v848_v8, %v568_v20  ;;  %1179 = vmatprep.mubr.bf16.mxu0 %v884_v1  ;;  %1228 = vmatprep.mubr.bf16.mxu1 %v886_v2 }
 0x13a   : > { %v863_v13 = vmul.f32 0.1, %v794_v5  ;;  %v865_v14 = vmul.f32 0.1, %v847_v6  ;;  %1180 = vmatmul.mubr.bf16.vlgmr.msra.gmra.mrb[8].mxu0 %v883_v55  ;;  %1229 = vmatmul.mubr.bf16.vlgmr.msra.gmra.mrb[8].mxu1 %v885_v56  ;;  %v875_v21 = vmax.f32 %v790_v57, %v859_v3  ;;  %v877_v22 = vmax.f32 %v843_v58, %v861_v4  ;;  %p1894_p12 = pnand %p1893_p11, %p2308_p10  ;;  %p1901_p2 = por %p1900_p1, %p1899_p0 }
 0x13b   : > { %v864_v15 = vmul.f32 0.1, %v796_v11  ;;  %v866_v16 = vmul.f32 0.1, %v849_v12  ;;  %v876_v17 = vmax.f32 %v792_v61, %v860_v9  ;;  %v878_v18 = vmax.f32 %v845_v62, %v862_v10 }
 0x13c   : > { %v879_v23 = vmax.f32 %v794_v5, %v863_v13  ;;  %v881_v24 = vmax.f32 %v847_v6, %v865_v14  ;;  %v1661_v47 = vunpack.c.h.bf16 %v1659_v33  ;;  %v1664_v2 = vunpack.c.l.bf16 %v1666_v54  ;;  %v1874_v33 = vld [vmem:[%s468_s22] sm:$0xff]   ;;  %p1895_p13 = pneg %p1894_p12 }
 0x13d   : > { %v880_v25 = vmax.f32 %v796_v11, %v864_v15  ;;  %v882_v26 = vmax.f32 %v849_v12, %v866_v16  ;;  %v1665_v6 = vunpack.c.h.bf16 %v1666_v54 }
 0x13e   : > { %v887_v27 = vpack.c.bf16 %v879_v23, %v875_v21  ;;  %v889_v19 = vpack.c.bf16 %v881_v24, %v877_v22  ;;  %p1902_p3 = pnand %p1901_p2, %p1895_p13 }
 0x13f   : > { %v888_v20 = vpack.c.bf16 %v880_v25, %v876_v17  ;;  %v890_v28 = vpack.c.bf16 %v882_v26, %v878_v18 }
 0x141   : > { %1187 = vmatprep.mubr.bf16.mxu0 %v888_v20  ;;  %1236 = vmatprep.mubr.bf16.mxu1 %v890_v28 }
 0x142   : > { %1188 = vmatmul.mubr.bf16.gmra.mrb[12].mxu0 %v887_v27  ;;  %1237 = vmatmul.mubr.bf16.gmra.mrb[12].mxu1 %v889_v19 }
 0x20d   : > { %v1683_v29 = vpop.f32.mrb[8].mxu0  ;;  %v1711_v30 = vpop.f32.mrb[8].mxu1 }
 0x20e   : > { %v1684_v31 = vpop.f32.mrb[9].mxu0  ;;  %v1712_v32 = vpop.f32.mrb[9].mxu1 }
 0x20f   : > { %v1685_v34 = vadd.f32 %v1684_v31, %v1683_v29  ;;  %v1713_v35 = vadd.f32 %v1712_v32, %v1711_v30  ;;  %v1686_v36 = vpop.f32.mrb[10].mxu0  ;;  %v1714_v37 = vpop.f32.mrb[10].mxu1  ;;  %v1964_v32 = vmov 0.0  }
 0x210   : > { %v1687_v38 = vpop.f32.mrb[11].mxu0  ;;  %v1715_v39 = vpop.f32.mrb[11].mxu1  ;;  %1727 = vmatprep.subr.bf16.mxu0 %v1964_v32  ;;  %1733 = vmatprep.subr.bf16.mxu1 %v1964_v32 }
 0x211   : > { %v1231_v41 = vadd.f32 %v1713_v35, %v1685_v34  ;;  %v1688_v42 = vadd.f32 %v1687_v38, %v1686_v36  ;;  %v1716_v43 = vadd.f32 %v1715_v39, %v1714_v37  ;;  %1729 = vmatprep.mubr.msk.bf16.mxu0 %vm1965_vm2, %v1964_v32  ;;  %1735 = vmatprep.mubr.msk.bf16.mxu1 %vm1965_vm2, %v1964_v32  ;;  %v1875_v34 = vld [vmem:[%s468_s22 + $0x8] sm:$0xff]  }
 0x213   : > { %v1234_v45 = vadd.f32 %v1716_v43, %v1688_v42  ;;  %v1247_v46 = vadd.f32 %v1246_v40, %v1231_v41 }
 0x215   : > { %v1689_v48 = vpop.f32.mrb[12].mxu0  ;;  %v1717_v49 = vpop.f32.mrb[12].mxu1  ;;  %v1259_v50 = vmul.f32 %v1660_v44, %v1247_v46  ;;  %v1248_v51 = vadd.f32 %v1246_v40, %v1234_v45 }
 0x216   : > { %v1690_v52 = vpop.f32.mrb[13].mxu0  ;;  %v1718_v53 = vpop.f32.mrb[13].mxu1 }
 0x217   : > { %v1691_v55 = vadd.f32 %v1690_v52, %v1689_v48  ;;  %v1719_v56 = vadd.f32 %v1718_v53, %v1717_v49  ;;  %v1692_v57 = vpop.f32.mrb[14].mxu0  ;;  %v1720_v58 = vpop.f32.mrb[14].mxu1  ;;  %v1264_v59 = vsel %vm1263_vm1, %v1259_v50, -inf  ;;  %v1260_v60 = vmul.f32 %v1661_v47, %v1248_v51  ;;  %v1308_v51 = vld [vmem:[#allocation6] sm:$0xf] }
 0x218   : > { %v1693_v61 = vpop.f32.mrb[15].mxu0  ;;  %v1721_v62 = vpop.f32.mrb[15].mxu1  ;;  %1265 = vmax.xlane.f32.xlu0 %v1264_v59 }
 0x219   : > { %v1239_v63 = vadd.f32 %v1719_v56, %v1691_v55  ;;  %v1694_v0 = vadd.f32 %v1693_v61, %v1692_v57  ;;  %v1722_v1 = vadd.f32 %v1721_v62, %v1720_v58  ;;  %v1267_v4 = vsel %vm1263_vm1, %v1260_v60, -inf  ;;  %v1309_v57 = vld [vmem:[#allocation6 + $0x4] sm:$0xf] }
 0x21b   : > { %v1242_v3 = vadd.f32 %v1722_v1, %v1694_v0  ;;  %v1249_v5 = vadd.f32 %v1246_v40, %v1239_v63 }
 0x21c   : > { %1268 = vmax.xlane.f32.xlu0 %v1267_v4 }
 0x21d   : > { %v1261_v7 = vmul.f32 %v1664_v2, %v1249_v5  ;;  %v1250_v8 = vadd.f32 %v1246_v40, %v1242_v3 }
 0x21f   : > { %v1270_v9 = vsel %vm1263_vm1, %v1261_v7, -inf  ;;  %v1262_v10 = vmul.f32 %v1665_v6, %v1250_v8 }
 0x220   : > { %1271 = vmax.xlane.f32.xlu1 %v1270_v9 }
 0x221   : > { %v1273_v11 = vsel %vm1263_vm1, %v1262_v10, -inf }
 0x224   : > { %1274 = vmax.xlane.f32.xlu1 %v1273_v11 }
 0x2a5   : > { %v1266_v12 = vpop.xlane.xlu0 %1265 }
 0x2a6   : > { %v1276_v13 = vsub.f32 %v1259_v50, %v1266_v12 }
 0x2a8   : > { %v1280_v14 = vmul.f32 1.442695, %v1276_v13 }
 0x2a9   : > { %v1269_v15 = vpop.xlane.xlu0 %1268 }
 0x2aa   : > { %1876 = vpow2.f32 %v1280_v14  ;;  %v1277_v16 = vsub.f32 %v1260_v60, %v1269_v15 }
 0x2ac   : > { %v1282_v21 = vmul.f32 1.442695, %v1277_v16 }
 0x2ad   : > { %v1272_v22 = vpop.xlane.xlu1 %1271 }
 0x2ae   : > { %1878 = vpow2.f32 %v1282_v21  ;;  %v1278_v23 = vsub.f32 %v1261_v7, %v1272_v22 }
 0x2b0   : > { %v1284_v24 = vmul.f32 1.442695, %v1278_v23 }
 0x2b1   : > { %v1275_v17 = vpop.xlane.xlu1 %1274 }
 0x2b2   : > { %1880 = vpow2.f32 %v1284_v24  ;;  %v1279_v18 = vsub.f32 %v1262_v10, %v1275_v17 }
 0x2b4   : > { %v1877_v25 = vpop.eup %1876  ;;  %v1286_v26 = vmul.f32 1.442695, %v1279_v18 }
 0x2b5   : > { %v1288_v27 = vsel %vm1263_vm1, %v1877_v25, 0.0 }
 0x2b6   : > { %1882 = vpow2.f32 %v1286_v26  ;;  %1289 = vadd.xlane.f32.xlu0 %v1288_v27 }
 0x2b8   : > { %v1879_v19 = vpop.eup %1878 }
 0x2b9   : > { %v1291_v20 = vsel %vm1263_vm1, %v1879_v19, 0.0 }
 0x2ba   : > { %1292 = vadd.xlane.f32.xlu1 %v1291_v20 }
 0x2bc   : > { %v1881_v28 = vpop.eup %1880 }
 0x2bd   : > { %v1294_v29 = vsel %vm1263_vm1, %v1881_v28, 0.0 }
 0x2be   : > { %1295 = vadd.xlane.f32.xlu0 %v1294_v29 }
 0x2c0   : > { %v1883_v30 = vpop.eup %1882 }
 0x2c1   : > { %v1297_v31 = vsel %vm1263_vm1, %v1883_v30, 0.0 }
 0x2c2   : > { %1298 = vadd.xlane.f32.xlu1 %v1297_v31 }
 0x2eb   : > { %1322 = vxpose.xlu0.c.b16.start.end [1/1] (short) (narrow) %v1874_v33, 16 }
 0x2ef   : > { %1387 = vxpose.xlu1.c.b16.start.end [1/1] (short) (narrow) %v1875_v34, 16 }
 0x343   : > { %v1290_v35 = vpop.xlane.xlu0 %1289 }
 0x344   : > { %1884 = vrcp.f32 %v1290_v35 }
 0x347   : > { %v1293_v36 = vpop.xlane.xlu1 %1292 }
 0x348   : > { %1886 = vrcp.f32 %v1293_v36 }
 0x34b   : > { %v1296_v37 = vpop.xlane.xlu0 %1295 }
 0x34c   : > { %1888 = vrcp.f32 %v1296_v37 }
 0x34e   : > { %v1885_v39 = vpop.eup %1884 }
 0x34f   : > { %v1299_v38 = vpop.xlane.xlu1 %1298  ;;  %v1304_v41 = vmul.f32 %v1885_v39, %v1877_v25 }
 0x350   : > { %1890 = vrcp.f32 %v1299_v38 }
 0x351   : > { %v1330_v44 = vpop.trf.xlu0 }
 0x352   : > { %v1887_v40 = vpop.eup %1886 }
 0x353   : > { %v1305_v42 = vmul.f32 %v1887_v40, %v1879_v19 }
 0x355   : > { %v1314_v43 = vpack.c.bf16 %v1305_v42, %v1304_v41  ;;  %v1395_v50 = vpop.trf.xlu1 }
 0x356   : > { %v1889_v45 = vpop.eup %1888 }
 0x357   : > { %1728 = vmatpush3.bf16.msra.mxu0 %v1314_v43  ;;  %v1306_v47 = vmul.f32 %v1889_v45, %v1881_v28 }
 0x35a   : > { %v1891_v46 = vpop.eup %1890  ;;  %1730 = vmatmul.mubr.msk.bf16.vlgmr.msra.gmra.mrb[16].mxu0 %vm1263_vm1, %v1330_v44 }
 0x35b   : > { %v1307_v48 = vmul.f32 %v1891_v46, %v1883_v30 }
 0x35d   : > { %v1315_v49 = vpack.c.bf16 %v1307_v48, %v1306_v47 }
 0x35f   : > { %1734 = vmatpush3.bf16.msra.mxu1 %v1315_v49 }
 0x362   : > { %1736 = vmatmul.mubr.msk.bf16.vlgmr.msra.gmra.mrb[16].mxu1 %vm1263_vm1, %v1395_v50 }
 0x42d   : > { %v1375_v52 = vpop.f32.mrb[16].mxu0 }
 0x42e   : > { %v1446_v53 = vadd.f32 %v1375_v52, %v1308_v51  ;;  %v1731_v54 = vpop.f32.mrb[17].mxu0 }
 0x42f   : > { %v1378_v55 = vpop.f32.mrb[18].mxu0 }
 0x430   : > { %1449 = vst.msk [vmem:[#allocation6] sm:$0xf] %vm1448_vm3, %v1446_v53  ;;  %v1732_v56 = vpop.f32.mrb[19].mxu0 }
 0x435   : > { %v1440_v58 = vpop.f32.mrb[16].mxu1 }
 0x436   : > { %v1447_v59 = vadd.f32 %v1440_v58, %v1309_v57  ;;  %v1737_v60 = vpop.f32.mrb[17].mxu1 }
 0x437   : > { %v1443_v61 = vpop.f32.mrb[18].mxu1 }
 0x438   : > { %1450 = vst.msk [vmem:[#allocation6 + $0x4] sm:$0xf] %vm1448_vm3, %v1447_v59  ;;  %v1738_v62 = vpop.f32.mrb[19].mxu1 }
 0x439   : > { %1905 = shalt.err (!%p1902_p3)
}
 0x43a   : > { %s1906_s20 = scalar_lea.hbm %s2356_s7, 128 }
 0x43b   : > { %p1907_p4 = scmp.ne.s32.totalorder %s2356_s7, %s1906_s20  ;;  %p1912_p7 = scmp.lt.u32.totalorder %s1906_s20, %s2356_s7 }
 0x43d   : > { %p1908_p5 = pnand %p1907_p4, %p2308_p10 }
 0x43f   : > { %p1909_p6 = pneg %p1908_p5 }
 0x441   : > { %p1914_p8 = pnand %p1912_p7, %p1909_p6 }
 0x443   : > { %1917 = shalt.err (!%p1914_p8)
}
 0x444   : > { %s1967_s14 = smov 64   ;;  %s1968_s15 = smov 4  }
 0x445   : > { %1740 = dma.vmem_to_hbm [thread:$0]  (%p2308_p10), %s1461_s21, 128, %s2356_s7, [#allocation7], %s1967_s14, %s1967_s14, %s1968_s15  }
 0x446   : > { %1939 = dma.done.wait (%p2308_p10), [#allocation7], 128  }
 0x447   : > { %1941 = vsyncadd (%p2308_p10), [#allocation7], 4294967168 }
 0x448 PF: > { %s19_s30 = sadd.s32 1, %s1960_s30   ;;  %s2359_s26 = smov %s1948_s27 }
 0x449   : > { %p16_p9 = scmp.ge.s32.totalorder %s19_s30, 6   ;;  %s2360_s27 = smov %s2052_s12 }
 0x44a   : > { %s2361_s28 = smov %s1956_s29  ;;  %s2362_s29 = smov %s2364_s8 }
 0x44b   :  { %18 = sbr.rel (!%p16_p9) target bundleno = 5 (0x5), region = 224 }
 0x452   :  { %1476 = vsyncpa [#allocation7], 1 }
 0x453   :  { %1478 = vsyncpa [#allocation7 + $0x1], 1 }

</bundles_post_ra>
